<compile_context>
chip_gen: v7x
topology: tpu7x:2x2x1
jax: 0.10.0
libtpu: 0.0.40
codegen_flags: <defaults>
</compile_context>

<pallas_src>
import functools

import jax
import jax.numpy as jnp
from jax.experimental import pallas as pl
from jax.experimental.pallas import tpu as pltpu


def _res2_stage_kernel(x_ref, w_ref, p_ref, o_ref, base_ref, stacked_ref, *,
                       width, k, dil, pad, t_valid, t_pad, mat_dtype):
    """One (batch b, stage s) grid step.

    x_ref      : [1, width, Tp]                input chunk s+1 of batch b
    w_ref      : [scale-1, width, k*width]     fused conv weights (VMEM-resident)
    p_ref      : [scale-1, 3, width, 1]        packed (conv bias, BN scale, BN shift)
    o_ref      : [1, width, Tp]                output channel block s+1 of batch b
    base_ref   : [width, Tp] f32               carry of the previous stage's activation
    stacked_ref: [k*width, Tp] mat_dtype       stacked conv RHS (taps along sublanes)
    """
    s = pl.program_id(1)

    @pl.when(s == 0)
    def _():
        base_ref[...] = jnp.zeros_like(base_ref)

    xin = x_ref[0, :, :].astype(jnp.float32) + base_ref[...]

    # Lane-index iota, (1, Tp): broadcasts over the width (sublane) axis.
    t_idx = jax.lax.broadcasted_iota(jnp.int32, (1, t_pad), 1)

    # Build the stacked RHS directly in scratch: row block j holds xin shifted
    # by (j*dil - pad) along time with zero fill == the zero-padded dilated taps.
    for j in range(k):
        sj = j * dil - pad                        # static tap shift
        if sj == 0:
            z = xin
        else:
            z = pltpu.roll(xin, (-sj) % t_pad, 1)  # XLU lane rotation
            if sj > 0:                             # mask the wrapped-around lanes
                z = jnp.where(t_idx < t_pad - sj, z, 0.0)
            else:
                z = jnp.where(t_idx >= -sj, z, 0.0)
        stacked_ref[j * width:(j + 1) * width, :] = z.astype(mat_dtype)

    w = w_ref[s]                                   # [width, k*width], resident
    y = jnp.dot(w, stacked_ref[...],               # single MXU matmul per stage
                preferred_element_type=jnp.float32)

    pvec = p_ref[s]                                # [3, width, 1]
    y = y + pvec[0]                                # conv bias, bcast over T
    y = jnp.maximum(y, 0.0)                        # ReLU
    y = y * pvec[1] + pvec[2]                      # eval-mode BN (folded affine)

    if t_pad != t_valid:
        # Zero the padded tail so it never leaks into the next stage's taps.
        y = jnp.where(t_idx < t_valid, y, 0.0)

    base_ref[...] = y
    o_ref[0, :, :] = y.astype(o_ref.dtype)


def res2block_pallas(x, weights, biases, bn_scale, bn_shift, *,
                     scale, kernels, dilation, matmul_dtype=jnp.bfloat16):
    """x: [B, C, T]. weights: [scale-1, width, width, kernels] (PyTorch OIW per stage)."""
    B, C, T = x.shape
    assert C % scale == 0, "channels must be divisible by scale"
    width = C // scale
    assert width % 8 == 0, (
        "width = channels // scale must be a multiple of 8 (sublane tiling); "
        "16 recommended when matmul_dtype is bf16")
    assert (kernels - 1) * dilation % 2 == 0, (
        "'same' output length requires (kernels-1)*dilation to be even")
    pad = (kernels - 1) * dilation // 2
    if scale == 1:                                  # no conv branches: passthrough
        return x
    n_stage = scale - 1

    # Lane-align time: pad to a multiple of 128 (crop after the call).
    t_pad = ((T + 127) // 128) * 128
    x_in = x if t_pad == T else jnp.pad(x, ((0, 0), (0, 0), (0, t_pad - T)))

    # Fused weights: w_f[s, c_out, j*width + c_in] = W[s, c_out, c_in, j]
    w_f = jnp.transpose(weights, (0, 1, 3, 2)).reshape(
        n_stage, width, kernels * width).astype(matmul_dtype)
    # Packed per-stage affine params: (conv bias, BN scale, BN shift).
    p = jnp.stack([biases, bn_scale, bn_shift], axis=1)[..., None].astype(jnp.float32)

    # Explicit scoped-VMEM budget from the actual footprint (+ headroom).
    itx = jnp.dtype(x.dtype).itemsize
    itm = jnp.dtype(matmul_dtype).itemsize
    blk = width * t_pad
    est = (2 * blk * itx                        # x block, double-buffered
           + 2 * blk * itx                      # out block, double-buffered
           + blk * 4                            # f32 carry scratch
           + kernels * blk * itm                # stacked RHS scratch
           + 2 * n_stage * width * kernels * width * itm   # resident weights
           + 2 * n_stage * 3 * width * 4)                  # resident params
    vmem_limit = min(max(int(est * 1.25) + (4 << 20), 32 << 20), 100 << 20)

    kern = functools.partial(_res2_stage_kernel, width=width, k=kernels,
                             dil=dilation, pad=pad, t_valid=T, t_pad=t_pad,
                             mat_dtype=matmul_dtype)

    out = pl.pallas_call(
        kern,
        out_shape=jax.ShapeDtypeStruct((B, C, t_pad), x.dtype),
        grid_spec=pltpu.PrefetchScalarGridSpec(
            num_scalar_prefetch=0,
            grid=(B, n_stage),                  # stage axis innermost (sequential)
            in_specs=[
                pl.BlockSpec((1, width, t_pad), lambda b, s: (b, s + 1, 0)),
                # Weights / params fully VMEM-resident: constant block index.
                pl.BlockSpec((n_stage, width, kernels * width),
                             lambda b, s: (0, 0, 0)),
                pl.BlockSpec((n_stage, 3, width, 1),
                             lambda b, s: (0, 0, 0, 0)),
            ],
            out_specs=pl.BlockSpec((1, width, t_pad), lambda b, s: (b, s + 1, 0)),
            scratch_shapes=[
                pltpu.VMEM((width, t_pad), jnp.float32),          # stage carry
                pltpu.VMEM((kernels * width, t_pad), matmul_dtype),  # stacked RHS
            ],
        ),
        compiler_params=pltpu.CompilerParams(
            dimension_semantics=("parallel", "arbitrary"),
            vmem_limit_bytes=vmem_limit),
        # Output aliases the input: channel block 0 (straight path) is never
        # read or written by the kernel and is preserved in the aliased buffer.
        input_output_aliases={0: 0},
    )(x_in, w_f, p)

    if t_pad != T:
        out = out[..., :T]
    return out


def res2block_ref(x, weights, biases, bn_scale, bn_shift, *,
                  scale, kernels, dilation):
    """Pure-JAX reference (mirrors the PyTorch forward, eval-mode BN)."""
    B, C, T = x.shape
    width = C // scale
    pad = (kernels - 1) * dilation // 2
    chunks = jnp.split(x, scale, axis=1)
    outs = [chunks[0]]
    base = jnp.zeros_like(chunks[0])
    for s in range(scale - 1):
        xin = chunks[s + 1] + base
        y = jax.lax.conv_general_dilated(
            xin, weights[s],
            window_strides=(1,), padding=[(pad, pad)],
            rhs_dilation=(dilation,),
            dimension_numbers=("NCH", "OIH", "NCH"))
        y = y + biases[s][None, :, None]
        y = jnp.maximum(y, 0.0)
        y = y * bn_scale[s][None, :, None] + bn_shift[s][None, :, None]
        base = y
        outs.append(y)
    return jnp.concatenate(outs, axis=1)


if __name__ == "__main__":
    # Small shapes consistent with the module: [B, C, T]
    B, C, T = 2, 64, 128
    scale, kernels, dilation = 4, 3, 2
    width = C // scale
    eps = 1e-5

    key = jax.random.PRNGKey(0)
    kx, kw, kb, kg, kbeta, km, kv = jax.random.split(key, 7)

    x = jax.random.normal(kx, (B, C, T), dtype=jnp.float32)

    # Conv1d params (PyTorch layout: [out, in, k]) for the (scale-1) stages.
    weights = 0.1 * jax.random.normal(
        kw, (scale - 1, width, width, kernels), dtype=jnp.float32)
    biases = 0.1 * jax.random.normal(kb, (scale - 1, width), dtype=jnp.float32)

    # BatchNorm1d params + running statistics (eval mode), folded into scale/shift.
    gamma = 1.0 + 0.1 * jax.random.normal(kg, (scale - 1, width), dtype=jnp.float32)
    beta = 0.1 * jax.random.normal(kbeta, (scale - 1, width), dtype=jnp.float32)
    run_mean = 0.1 * jax.random.normal(km, (scale - 1, width), dtype=jnp.float32)
    run_var = jax.random.uniform(kv, (scale - 1, width), dtype=jnp.float32,
                                 minval=0.5, maxval=1.5)
    bn_scale = gamma / jnp.sqrt(run_var + eps)
    bn_shift = beta - run_mean * bn_scale

    # Reference first (guards against any surprise from output aliasing).
    ref = res2block_ref(x, weights, biases, bn_scale, bn_shift,
                        scale=scale, kernels=kernels, dilation=dilation)
    ref = jax.block_until_ready(ref)

    # Exact (f32 MXU) path: tight tolerance.
    out_f32 = res2block_pallas(x, weights, biases, bn_scale, bn_shift,
                               scale=scale, kernels=kernels, dilation=dilation,
                               matmul_dtype=jnp.float32)
    out_f32 = jax.block_until_ready(out_f32)
    assert out_f32.shape == (B, C, T)
    assert jnp.allclose(out_f32, ref, atol=1e-4, rtol=1e-4), (
        float(jnp.max(jnp.abs(out_f32 - ref))))

    # Default fast (bf16 MXU) path: looser tolerance.
    out_bf16 = res2block_pallas(x, weights, biases, bn_scale, bn_shift,
                                scale=scale, kernels=kernels, dilation=dilation)
    out_bf16 = jax.block_until_ready(out_bf16)
    assert out_bf16.shape == (B, C, T)
    assert jnp.allclose(out_bf16, ref, atol=6e-2, rtol=6e-2), (
        float(jnp.max(jnp.abs(out_bf16 - ref))))

    print("KERNEL_OK")
</pallas_src>

<mosaic_0001>
module attributes {stable_mosaic.version = 11 : i64} {
  func.func @_res2_stage_kernel(%arg0: i32, %arg1: i32, %arg2: memref<1x16x128xf32, #tpu.memory_space<vmem>>, %arg3: memref<3x16x48xf32, #tpu.memory_space<vmem>>, %arg4: memref<3x3x16x1xf32, #tpu.memory_space<vmem>>, %arg5: memref<1x16x128xf32, #tpu.memory_space<vmem>>, %arg6: memref<16x128xf32, #tpu.memory_space<vmem>>, %arg7: memref<48x128xf32, #tpu.memory_space<vmem>>) attributes {dimension_semantics = [#tpu.dimension_semantics<parallel>, #tpu.dimension_semantics<arbitrary>], iteration_bounds = array<i64: 2, 3>, scalar_prefetch = 0 : i64, scratch_operands = 2 : i64, tpu.core_type = #tpu.core_type<tc>, window_params = [{transform_indices = @transform_0, window_bounds = array<i64: 1, 16, 128>}, {pipeline_mode = #tpu.pipeline_mode<synchronous>, transform_indices = @transform_1, window_bounds = array<i64: 3, 16, 48>}, {pipeline_mode = #tpu.pipeline_mode<synchronous>, transform_indices = @transform_2, window_bounds = array<i64: 3, 3, 16, 1>}, {transform_indices = @transform_3, window_bounds = array<i64: 1, 16, 128>}]} {
    %c0_i32 = arith.constant 0 : i32
    %0 = arith.cmpi eq, %arg1, %c0_i32 : i32
    %1 = arith.extui %0 : i1 to i32
    %c0_i32_0 = arith.constant 0 : i32
    %2 = arith.cmpi ne, %1, %c0_i32_0 : i32
    scf.if %2 {
      %cst_26 = arith.constant 0.000000e+00 : f32
      %51 = vector.broadcast %cst_26 : f32 to vector<16x128xf32>
      %c0_27 = arith.constant 0 : index
      %c0_28 = arith.constant 0 : index
      %52 = vector.load %arg6[%c0_27, %c0_28] : memref<16x128xf32, #tpu.memory_space<vmem>>, vector<16x128xf32>
      tpu.vector_store %arg6[%c0_27, %c0_28], %51 {strides = array<i32>} : memref<16x128xf32, #tpu.memory_space<vmem>>, vector<16x128xf32>,
    } else {
    }
    %c0 = arith.constant 0 : index
    %c0_1 = arith.constant 0 : index
    %c0_2 = arith.constant 0 : index
    %3 = vector.load %arg2[%c0, %c0_1, %c0_2] : memref<1x16x128xf32, #tpu.memory_space<vmem>>, vector<1x16x128xf32>
    %4 = vector.shape_cast %3 : vector<1x16x128xf32> to vector<16x128xf32>
    %c0_3 = arith.constant 0 : index
    %c0_4 = arith.constant 0 : index
    %5 = vector.load %arg6[%c0_3, %c0_4] : memref<16x128xf32, #tpu.memory_space<vmem>>, vector<16x128xf32>
    %6 = arith.addf %4, %5 : vector<16x128xf32>
    %7 = tpu.iota {dimensions = array<i32: 1>} : vector<1x128xi32>
    %c2_i32 = arith.constant 2 : i32
    %8 = tpu.dynamic_rotate %6 by %c2_i32 dim 1 : vector<16x128xf32>, i32 -> vector<16x128xf32>
    %c2_i32_5 = arith.constant 2 : i32
    %9 = vector.broadcast %c2_i32_5 : i32 to vector<1x128xi32>
    %10 = arith.cmpi sge, %7, %9 : vector<1x128xi32>
    %cst = arith.constant 0.000000e+00 : f32
    %11 = vector.shape_cast %10 : vector<1x128xi1> to vector<1x128xi1>
    %12 = vector.broadcast %11 : vector<1x128xi1> to vector<16x128xi1>
    %13 = vector.broadcast %cst : f32 to vector<16x128xf32>
    %14 = arith.select %12, %8, %13 : vector<16x128xi1>, vector<16x128xf32>
    %c0_6 = arith.constant 0 : index
    %c0_7 = arith.constant 0 : index
    %15 = vector.load %arg7[%c0_6, %c0_7] : memref<48x128xf32, #tpu.memory_space<vmem>>, vector<16x128xf32>
    tpu.vector_store %arg7[%c0_6, %c0_7], %14 {strides = array<i32>} : memref<48x128xf32, #tpu.memory_space<vmem>>, vector<16x128xf32>,
    %c16 = arith.constant 16 : index
    %c0_8 = arith.constant 0 : index
    %16 = vector.load %arg7[%c16, %c0_8] : memref<48x128xf32, #tpu.memory_space<vmem>>, vector<16x128xf32>
    tpu.vector_store %arg7[%c16, %c0_8], %6 {strides = array<i32>} : memref<48x128xf32, #tpu.memory_space<vmem>>, vector<16x128xf32>,
    %c126_i32 = arith.constant 126 : i32
    %17 = tpu.dynamic_rotate %6 by %c126_i32 dim 1 : vector<16x128xf32>, i32 -> vector<16x128xf32>
    %c126_i32_9 = arith.constant 126 : i32
    %18 = vector.broadcast %c126_i32_9 : i32 to vector<1x128xi32>
    %19 = arith.cmpi slt, %7, %18 : vector<1x128xi32>
    %cst_10 = arith.constant 0.000000e+00 : f32
    %20 = vector.shape_cast %19 : vector<1x128xi1> to vector<1x128xi1>
    %21 = vector.broadcast %20 : vector<1x128xi1> to vector<16x128xi1>
    %22 = vector.broadcast %cst_10 : f32 to vector<16x128xf32>
    %23 = arith.select %21, %17, %22 : vector<16x128xi1>, vector<16x128xf32>
    %c32 = arith.constant 32 : index
    %c0_11 = arith.constant 0 : index
    %24 = vector.load %arg7[%c32, %c0_11] : memref<48x128xf32, #tpu.memory_space<vmem>>, vector<16x128xf32>
    tpu.vector_store %arg7[%c32, %c0_11], %23 {strides = array<i32>} : memref<48x128xf32, #tpu.memory_space<vmem>>, vector<16x128xf32>,
    %25 = arith.index_cast %arg1 : i32 to index
    %c0_12 = arith.constant 0 : index
    %c0_13 = arith.constant 0 : index
    %26 = vector.load %arg3[%25, %c0_12, %c0_13] : memref<3x16x48xf32, #tpu.memory_space<vmem>>, vector<1x16x48xf32>
    %27 = vector.shape_cast %26 : vector<1x16x48xf32> to vector<16x48xf32>
    %c0_14 = arith.constant 0 : index
    %c0_15 = arith.constant 0 : index
    %28 = vector.load %arg7[%c0_14, %c0_15] : memref<48x128xf32, #tpu.memory_space<vmem>>, vector<48x128xf32>
    %cst_16 = arith.constant dense<0.000000e+00> : vector<16x128xf32>
    %29 = tpu.matmul %27, %28, %cst_16 {dimension_numbers = #tpu.dot_dimension_numbers<[1], [0], [0], [1], [0, 0, 1, 1], [], []>} : vector<16x48xf32>, vector<48x128xf32>, vector<16x128xf32> -> vector<16x128xf32>
    %30 = arith.index_cast %arg1 : i32 to index
    %c0_17 = arith.constant 0 : index
    %c0_18 = arith.constant 0 : index
    %c0_19 = arith.constant 0 : index
    %31 = vector.load %arg4[%30, %c0_17, %c0_18, %c0_19] : memref<3x3x16x1xf32, #tpu.memory_space<vmem>>, vector<1x3x16x1xf32>
    %32 = vector.shape_cast %31 : vector<1x3x16x1xf32> to vector<3x16x1xf32>
    %33 = vector.extract_strided_slice %32 {offsets = [0, 0, 0], sizes = [1, 16, 1], strides = [1, 1, 1]} : vector<3x16x1xf32> to vector<1x16x1xf32>
    %34 = vector.shape_cast %33 : vector<1x16x1xf32> to vector<16x1xf32>
    %35 = vector.broadcast %34 : vector<16x1xf32> to vector<16x128xf32>
    %36 = arith.addf %29, %35 : vector<16x128xf32>
    %cst_20 = arith.constant 0.000000e+00 : f32
    %37 = vector.broadcast %cst_20 : f32 to vector<16x128xf32>
    %38 = arith.maximumf %36, %37 : vector<16x128xf32>
    %39 = vector.extract_strided_slice %32 {offsets = [1, 0, 0], sizes = [1, 16, 1], strides = [1, 1, 1]} : vector<3x16x1xf32> to vector<1x16x1xf32>
    %40 = vector.shape_cast %39 : vector<1x16x1xf32> to vector<16x1xf32>
    %41 = vector.broadcast %40 : vector<16x1xf32> to vector<16x128xf32>
    %42 = arith.mulf %38, %41 : vector<16x128xf32>
    %43 = vector.extract_strided_slice %32 {offsets = [2, 0, 0], sizes = [1, 16, 1], strides = [1, 1, 1]} : vector<3x16x1xf32> to vector<1x16x1xf32>
    %44 = vector.shape_cast %43 : vector<1x16x1xf32> to vector<16x1xf32>
    %45 = vector.broadcast %44 : vector<16x1xf32> to vector<16x128xf32>
    %46 = arith.addf %42, %45 : vector<16x128xf32>
    %c0_21 = arith.constant 0 : index
    %c0_22 = arith.constant 0 : index
    %47 = vector.load %arg6[%c0_21, %c0_22] : memref<16x128xf32, #tpu.memory_space<vmem>>, vector<16x128xf32>
    tpu.vector_store %arg6[%c0_21, %c0_22], %46 {strides = array<i32>} : memref<16x128xf32, #tpu.memory_space<vmem>>, vector<16x128xf32>,
    %c0_23 = arith.constant 0 : index
    %c0_24 = arith.constant 0 : index
    %c0_25 = arith.constant 0 : index
    %48 = vector.load %arg5[%c0_23, %c0_24, %c0_25] : memref<1x16x128xf32, #tpu.memory_space<vmem>>, vector<1x16x128xf32>
    %49 = vector.shape_cast %48 : vector<1x16x128xf32> to vector<16x128xf32>
    %50 = vector.shape_cast %46 : vector<16x128xf32> to vector<1x16x128xf32>
    tpu.vector_store %arg5[%c0_23, %c0_24, %c0_25], %50 {strides = array<i32>} : memref<1x16x128xf32, #tpu.memory_space<vmem>>, vector<1x16x128xf32>,
    return
  }
  func.func @transform_0(%arg0: i32, %arg1: i32) -> (i32, i32, i32) {
    %c1_i32 = arith.constant 1 : i32
    %0 = arith.addi %arg1, %c1_i32 : i32
    %c0_i32 = arith.constant 0 : i32
    %c0_i32_0 = arith.constant 0 : i32
    return %arg0, %0, %c0_i32 : i32, i32, i32
  }
  func.func @transform_1(%arg0: i32, %arg1: i32) -> (i32, i32, i32) {
    %c0_i32 = arith.constant 0 : i32
    %c0_i32_0 = arith.constant 0 : i32
    %c0_i32_1 = arith.constant 0 : i32
    %c0_i32_2 = arith.constant 0 : i32
    return %c0_i32, %c0_i32_0, %c0_i32_1 : i32, i32, i32
  }
  func.func @transform_2(%arg0: i32, %arg1: i32) -> (i32, i32, i32, i32) {
    %c0_i32 = arith.constant 0 : i32
    %c0_i32_0 = arith.constant 0 : i32
    %c0_i32_1 = arith.constant 0 : i32
    %c0_i32_2 = arith.constant 0 : i32
    %c0_i32_3 = arith.constant 0 : i32
    return %c0_i32, %c0_i32_0, %c0_i32_1, %c0_i32_2 : i32, i32, i32, i32
  }
  func.func @transform_3(%arg0: i32, %arg1: i32) -> (i32, i32, i32) {
    %c1_i32 = arith.constant 1 : i32
    %0 = arith.addi %arg1, %c1_i32 : i32
    %c0_i32 = arith.constant 0 : i32
    %c0_i32_0 = arith.constant 0 : i32
    return %arg0, %0, %c0_i32 : i32, i32, i32
  }
}

</mosaic_0001>

<bundles_post_ra>
// kernel: tpu_custom_call.1
= control target key start
LH: loop header
LB: loop body
LE: loop exit
PB: predicated region body
PF: predicated region fallthrough
CT: control target
= control target key end

     0   :  { %8 = vsyncpa [#allocation5], 0  ;;  %s1049_s0 = inlined_call_operand.hbm [shape: f32[2,64,128], index: 0, kind: input, shape index: {}, may-alias: {0,3}]   ;;  %s1050_s1 = inlined_call_operand.vmem [shape: f32[3,16,48], index: 1, kind: input, shape index: {}]   ;;  %s1051_s2 = inlined_call_operand.vmem [shape: f32[3,3,16,1], index: 2, kind: input, shape index: {}]   ;;  %s1052_s3 = inlined_call_operand.hbm [shape: f32[2,64,128], index: 3, kind: output, shape index: {}, may-alias: {0,3}]  }
   0x1   :  { %10 = vsyncpa [#allocation5 + $0x1], 0 }
   0x2   :  { %11 = vsyncpa [#allocation6], 0 }
   0x3   :  { %13 = vsyncpa [#allocation6 + $0x1], 0  ;;  %s831_s12 = smov 0   ;;  %s833_s13 = smov 0  }
   0x4   :  { %s835_s14 = smov 0   ;;  %s837_s15 = smov 0  }
   0x5   :  { %s839_s16 = smov 0   ;;  %s841_s17 = smov 0  }
   0x6   :  { %s843_s18 = smov 0   ;;  %s845_s19 = smov 0  }
   0x7 LB: > { %s507_s20 = sadd.s32 4294967295, %s799_s19   ;;  %s508_s21 = sadd.s32 4294967294, %s799_s19   ;;  %s799_s19 = sphi %s845_s19, %s19_s19   ;;  %s795_s18 = sphi %s843_s18, %s1070_s18   ;;  %s791_s17 = sphi %s841_s17, %s1069_s17   ;;  %s787_s16 = sphi %s839_s16, %s1068_s16   ;;  %s783_s15 = sphi %s837_s15, %s1067_s15   ;;  %s779_s14 = sphi %s835_s14, %s1066_s14   ;;  %s775_s13 = sphi %s833_s13, %s1065_s13   ;;  %s771_s12 = sphi %s831_s12, %s1064_s12  }
   0x8   : > { %s28_s22 = sadd.s32 1, %s791_s17  ;;  %s31_s23 = sadd.s32 1, %s795_s18 }
   0x9   : > { %p29_p0 = scmp.ge.s32.totalorder %s28_s22, 3  ;;  %s42_s24 = sadd.s32 1, %s779_s14 }
   0xa   : > { %p49_p1 = scmp.ne.s32.totalorder %s779_s14, %s775_s13  ;;  %p50_p2 = scmp.eq.s32.totalorder %s799_s19, 0 }
   0xb   : > { %s879_s25 = scalar_select %p29_p0, 0, %s28_s22  }
   0xc   : > { %s1072_s23 = smov (!%p29_p0, %s31_s23), %s795_s18  ;;  %p886_p3 = por %p50_p2, %p49_p1 }
   0xd   : > { %s36_s26 = sadd.s32 1, %s879_s25  ;;  %p33_p4 = scmp.ge.s32.totalorder %s1072_s23, 2 }
   0xe   : > { %s38_s28 = ssub.s32 %s28_s22, %s36_s26  ;;  %p55_p5 = scmp.ne.s32.totalorder %s775_s13, %s771_s12 }
   0xf   : > { %p56_p6 = scmp.eq.s32.totalorder %s507_s20, 0  ;;  %s1074_s23 = smov (%p33_p4, %s1072_s23), 0 }
  0x10   : > { %1056 = sst [smem:[#allocation10_spill]] %s1074_s23  ;;  %p125_p8 = scmp.eq.s32.totalorder %s507_s20, 5 }
  0x11   : > { %p894_p7 = por %p56_p6, %p55_p5  ;;  %s37_s30 = ssub.s32 %s795_s18, %s1074_s23 }
  0x12   : > { %p131_p9 = scmp.eq.s32.totalorder %s508_s21, 5  ;;  %s39_s4 = sor.u32 %s38_s28, %s37_s30 }
  0x13   : > { %p903_p10 = por %p125_p8, %p49_p1  ;;  %p40_p11 = scmp.eq.s32.totalorder %s39_s4, 0 }
  0x14   : > { %p907_p12 = por %p131_p9, %p55_p5  ;;  %p583_p13 = scmp.lt.s32.totalorder %s799_s19, 6 }
  0x15   : > { %s1058_s5 = scalar_select %p903_p10, 1, 0 }
  0x16   : > { %s1059_s6 = scalar_select %p907_p12, 1, 0 }
  0x17   : > { %s913_s7 = scalar_select %p40_p11, %s779_s14, %s42_s24  }
  0x18   : > { %s157_s8 = sand.u32 1, %s779_s14   ;;  %s512_s9 = sshll.u32 %s791_s17, 1 }
  0x19   : > { %s511_s10 = sshll.u32 %s157_s8, 4  ;;  %s513_s11 = sshll.u32 %s795_s18, 3 }
  0x1a   : > { %s443_s20 = sadd.s32 %s513_s11, %s512_s9  ;;  %s161_s21 = scalar_lea.vmem [#allocation4], %s511_s10 }
  0x1b   : > { %s171_s22 = sshll.u32 %s161_s21, 4  ;;  %s514_s26 = sshll.u32 %s443_s20, 7  ;;  %s918_s22 = int_to_ptr.vmem [resolvable:$true] %s171_s22 }
  0x1c   : > { %s445_s4 = scalar_lea.hbm %s1049_s0, %s514_s26  ;;  %p925_p0 = pnand %p583_p13, %p886_p3 }
  0x1d   : > { %s929_s24 = scalar_lea.hbm %s445_s4, 256  ;;  %s931_s9 = scalar_lea.sflag [#allocation5], %s157_s8 }
  0x1e   : > { %s699_s10 = scalar_lea.hbm %s445_s4, 512  ;;  %p671_p2 = pneg %p925_p0 }
  0x1f   : > { %p670_p1 = scmp.ne.s32.totalorder %s929_s24, %s699_s10  ;;  %s674_s20 = scalar_lea.hbm %s1049_s0, 2048 }
  0x20   : > { %p675_p5 = scmp.lt.u32.totalorder %s929_s24, %s1049_s0  ;;  %p676_p6 = scmp.lt.u32.totalorder %s674_s20, %s699_s10 }
  0x21   : > { %p672_p4 = pnand %p671_p2, %p670_p1  ;;  %p678_p9 = scmp.lt.u32.totalorder %s699_s10, %s929_s24 }
  0x22   : > { %p677_p8 = por %p676_p6, %p675_p5 }
  0x23   : > { %p673_p3 = pneg %p672_p4 }
  0x24   : > { %p679_p11 = por %p678_p9, %p677_p8 }
  0x26   : > { %p680_p13 = pnand %p679_p11, %p673_p3 }
  0x28   : > { %683 = shalt.err (!%p680_p13)
}
  0x29   : > { %s684_s8 = scalar_lea.vmem %s918_s22, 256  ;;  %s801_s28 = smov [#allocation4]  }
  0x2a   : > { %p685_p1 = scmp.ne.s32.totalorder %s918_s22, %s684_s8  ;;  %s689_s30 = sshll.u32 %s801_s28, 4  ;;  %s690_s30 = int_to_ptr.vmem [resolvable:$false] %s689_s30 }
  0x2b   : > { %s691_s4 = scalar_lea.vmem %s690_s30, 512  ;;  %p692_p10 = scmp.lt.s32.totalorder %s918_s22, %s690_s30 }
  0x2c   : > { %p687_p4 = pnand %p685_p1, %p671_p2  ;;  %p693_p5 = scmp.lt.s32.totalorder %s691_s4, %s684_s8 }
  0x2e   : > { %p688_p12 = pneg %p687_p4  ;;  %p694_p6 = por %p693_p5, %p692_p10 }
  0x30   : > { %p695_p8 = pnand %p694_p6, %p688_p12 }
  0x32   : > { %698 = shalt.err (!%p695_p8)
}
  0x33   : > { %s802_s10 = smov 128   ;;  %s803_s27 = smov 8  }
  0x34   : > { %578 = dma.hbm_to_vmem [thread:$0]  (!%p925_p0), %s929_s24, 256, %s918_s22, %s931_s9, %s802_s10, %s802_s10, %s803_s27  }
  0x35   : > { %p515_p2 = scmp.ge.s32.totalorder %s799_s19, 1  ;;  %p179_p3 = scmp.lt.s32.totalorder %s799_s19, 7 }
  0x37   : > { %p180_p9 = pnand %p515_p2, %p179_p3 }
  0x38   : > { %s961_s11 = sand.u32 (!%p180_p9), 1, %s775_s13  }
  0x39   : > { %183 = sbr.rel (%p180_p9) target bundleno = 447 (0x1bf), region = 32  ;;  %s516_s20 = sshll.u32 (!%p180_p9), %s961_s11, 4 }
  0x3a   : > { %s186_s21 = scalar_lea.sflag (!%p180_p9), [#allocation5], %s961_s11  ;;  %s189_s26 = scalar_lea.vmem (!%p180_p9), [#allocation4], %s516_s20 }
  0x40   : > { %762 = dma.done.wait (%p894_p7), %s186_s21, 256  }
  0x41   : > { %764 = vsyncadd (%p894_p7), %s186_s21, 4294967040  ;;  %s969_s23 = scalar_lea.vmem [#allocation7], %s516_s20  ;;  %p518_p10 = scmp.ne.s32.totalorder %s783_s15, 0 }
  0x42   : > { %v804_v0 = vmov (!%p518_p10), 0.0  }
  0x43   : > { %219 = sbr.rel (%p518_p10) target bundleno = 74 (0x4a), region = 40  ;;  %220 = vst [vmem:[#allocation2] sm:$0xff] (!%p518_p10), %v804_v0  ;;  %221 = vst [vmem:[#allocation2 + $0x8] sm:$0xff] (!%p518_p10), %v804_v0 }
  0x4a PF: > { %v222_v1 = vld [vmem:[%s189_s26] sm:$0xff]  ;;  %v223_v2 = vld [vmem:[%s189_s26 + $0x8] sm:$0xff]  ;;  %s519_s29 = sshll.u32 %s783_s15, 4  ;;  %s805_s22 = smov 2   ;;  %vm282_vm0 = vcmask 392192   ;;  %v807_v10 = vmov 0   ;;  %v228_v17 = vlaneseq }
  0x4b   : > { %v224_v3 = vld [vmem:[#allocation2] sm:$0xff]  ;;  %v225_v4 = vld [vmem:[#allocation2 + $0x8] sm:$0xff]  ;;  %s976_s8 = scalar_lea.vmem %s1050_s1, %s519_s29  ;;  %s264_s28 = smul.u32 48, %s783_s15  ;;  %667 = vset.pattern.permute.xlu1 %v807_v10  ;;  %668 = vset.pattern.permute.xlu0 %v807_v10 }
  0x4c   : > { %v226_v5 = vadd.f32 %v224_v3, %v222_v1  ;;  %v227_v6 = vadd.f32 %v225_v4, %v223_v2  ;;  %v256_v9 = vld [vmem:[%s976_s8] sm:$0xff]  ;;  %s806_s30 = smov 126   ;;  %v229_v18 = vand.u32 127, %v228_v17  ;;  %v257_v27 = vld [vmem:[%s976_s8 + $0x8] sm:$0xff]  ;;  %s523_s20 = sshll.u32 %s783_s15, 1 }
  0x4d   : > { %552 = vmatprep.mubr.msk.f32.mxu0 %vm282_vm0, %v256_v9  ;;  %s265_s27 = scalar_lea.vmem %s1051_s2, %s264_s28  ;;  %s524_s21 = sshll.u32 %s787_s16, 3 }
  0x4e   : > { %v657_v7 = vpack.i.bf16 %v227_v6, %v226_v5  ;;  %v561_v8 = vpack.c.bf16 %v227_v6, %v226_v5  ;;  %v266_v11 = vld [vmem:[%s265_s27] sm:$0xff]  ;;  %v268_v12 = vld [vmem:[%s265_s27 + $0x10] sm:$0xff]  ;;  %v267_v13 = vld [vmem:[%s265_s27 + $0x8] sm:$0xff]  ;;  %vm234_vm1 = vcmp.ge.s32.totalorder %v229_v18, 2  ;;  %vm247_vm3 = vcmp.lt.s32.totalorder %v229_v18, 126  ;;  %s465_s26 = sadd.s32 %s524_s21, %s523_s20  ;;  %s411_s8 = sshll.u32 %s969_s23, 4  ;;  %s994_s8 = int_to_ptr.vmem [resolvable:$true] %s411_s8 }
  0x4f   : > { %274 = vperm.xlu1 %667, %v266_v11   ;;  %v271_v14 = vld [vmem:[%s265_s27 + $0x28] sm:$0xff]  ;;  %v269_v15 = vld [vmem:[%s265_s27 + $0x18] sm:$0xff]  ;;  %v270_v16 = vld [vmem:[%s265_s27 + $0x20] sm:$0xff]  ;;  %s525_s29 = sshll.u32 %s465_s26, 7  ;;  %s395_s16 = scalar_lea.sflag [#allocation6], %s961_s11 }
  0x50   : > { %658 = vrot.lane.b32.xlu0 %v657_v7, %s805_s22  ;;  %vm556_vm2 = vmpackc.low %vm234_vm1, %vm234_vm1  ;;  %s467_s9 = scalar_lea.hbm %s1052_s3, %s525_s29  ;;  %s700_s28 = scalar_lea.vmem %s994_s8, 256 }
  0x51   : > { %vm566_vm4 = vmpackc.low %vm247_vm3, %vm247_vm3  ;;  %s992_s15 = scalar_lea.hbm %s467_s9, 256  ;;  %p701_p7 = scmp.ne.s32.totalorder %s994_s8, %s700_s28 }
  0x52   : > { %p1061_p12 = scmp.ne.s32.totalorder %s1058_s5, 0 }
  0x53   : > { %279 = vperm.xlu1 %667, %v267_v13  }
  0x54   : > { %663 = vrot.lane.b32.xlu0 %v657_v7, %s806_s30  ;;  %p702_p0 = pnand %p701_p7, %p1061_p12  ;;  %s808_s30 = smov [#allocation7]  }
  0x55   : > { %s704_s4 = sshll.u32 %s808_s30, 4  ;;  %s705_s4 = int_to_ptr.vmem [resolvable:$false] %s704_s4 }
  0x56   : > { %p703_p11 = pneg %p702_p0  ;;  %s706_s10 = scalar_lea.vmem %s705_s4, 512 }
  0x57   : > { %373 = vperm.xlu1 %667, %v269_v15   ;;  %p707_p13 = scmp.lt.s32.totalorder %s994_s8, %s705_s4  ;;  %p708_p1 = scmp.lt.s32.totalorder %s706_s10, %s700_s28 }
  0x58   : > { %368 = vperm.xlu0 %668, %v268_v12  }
  0x59   : > { %p709_p4 = por %p708_p1, %p707_p13 }
  0x5b   : > { %380 = vperm.xlu1 %667, %v270_v16   ;;  %p710_p5 = pnand %p709_p4, %p703_p11 }
  0x5c   : > { %385 = vperm.xlu0 %668, %v271_v14  }
  0xc2   : > { %v659_v19 = vpop.permute.xlu0 %658 }
  0xc3   : > { %v661_v20 = vunpack.i.h.bf16 %v659_v19  ;;  %v660_v21 = vunpack.i.l.bf16 %v659_v19 }
  0xc5   : > { %v555_v22 = vpack.c.bf16 %v661_v20, %v660_v21 }
  0xc6   : > { %v664_v23 = vpop.permute.xlu0 %663 }
  0xc7   : > { %557 = vmatprep.subr.msk.bf16.mxu0 %vm556_vm2, %v555_v22  ;;  %v666_v24 = vunpack.i.h.bf16 %v664_v23  ;;  %v665_v25 = vunpack.i.l.bf16 %v664_v23 }
  0xc8   : > { %560 = vmatpush3.bf16.msk.msra.mxu0 %vm556_vm2, %v555_v22 }
  0xc9   : > { %v565_v26 = vpack.c.bf16 %v666_v24, %v665_v25  ;;  %562 = vmatprep.subr.bf16.mxu0 %v561_v8 }
  0xcc   : > { %564 = vmatpush3.bf16.msra.mxu0 %v561_v8 }
  0xcd   : > { %567 = vmatprep.subr.msk.bf16.mxu0 %vm566_vm4, %v565_v26 }
  0xce   : > { %v275_v28 = vpop.permute.xlu1 %274 }
  0xd0   : > { %570 = vmatpush3.bf16.msk.msra.mxu0 %vm566_vm4, %v565_v26 }
  0xd2   : > { %v280_v29 = vpop.permute.xlu1 %279 }
  0xd3   : > { %553 = vmatmul.mubr.msk.f32.vlgmr.msra.gmra.mrb[0].mxu0 %vm282_vm0, %v257_v27 }
  0xd6   : > { %v374_v32 = vpop.permute.xlu1 %373 }
  0xd7   : > { %v369_v30 = vpop.permute.xlu0 %368 }
  0xda   : > { %v381_v41 = vpop.permute.xlu1 %380 }
  0xdb   : > { %v386_v40 = vpop.permute.xlu0 %385 }
 0x1a6   : > { %v554_v31 = vpop.f32.mrb[0].mxu0 }
 0x1a7   : > { %v361_v33 = vadd.f32 %v554_v31, %v280_v29  ;;  %v355_v34 = vpop.f32.mrb[1].mxu0 }
 0x1a8   : > { %v356_v35 = vadd.f32 %v355_v34, %v275_v28 }
 0x1a9   : > { %v365_v36 = vmax.f32 %v361_v33, 0.0 }
 0x1aa   : > { %v364_v37 = vmax.f32 %v356_v35, 0.0 }
 0x1ab   : > { %v377_v38 = vmul.f32 %v374_v32, %v365_v36 }
 0x1ac   : > { %v376_v39 = vmul.f32 %v369_v30, %v364_v37 }
 0x1ad   : > { %v389_v42 = vadd.f32 %v386_v40, %v377_v38 }
 0x1ae   : > { %v388_v43 = vadd.f32 %v381_v41, %v376_v39 }
 0x1af   : > { %391 = vst [vmem:[#allocation2 + $0x8] sm:$0xff] %v389_v42  ;;  %393 = vst [vmem:[%s969_s23 + $0x8] sm:$0xff] %v389_v42 }
 0x1b0   : > { %390 = vst [vmem:[#allocation2] sm:$0xff] %v388_v43  ;;  %392 = vst [vmem:[%s969_s23] sm:$0xff] %v388_v43 }
 0x1b1   : > { %713 = shalt.err (!%p710_p5)
}
 0x1b2   : > { %s728_s27 = scalar_lea.hbm %s467_s9, 512  ;;  %s718_s21 = scalar_lea.hbm %s1052_s3, 2048 }
 0x1b3   : > { %p715_p6 = scmp.ne.s32.totalorder %s992_s15, %s728_s27  ;;  %p719_p3 = scmp.lt.u32.totalorder %s992_s15, %s1052_s3 }
 0x1b4   : > { %p720_p9 = scmp.lt.u32.totalorder %s718_s21, %s728_s27  ;;  %p722_p7 = scmp.lt.u32.totalorder %s728_s27, %s992_s15 }
 0x1b5   : > { %p716_p8 = pnand %p715_p6, %p1061_p12 }
 0x1b6   : > { %p721_p10 = por %p720_p9, %p719_p3 }
 0x1b7   : > { %p717_p2 = pneg %p716_p8 }
 0x1b8   : > { %p723_p0 = por %p722_p7, %p721_p10 }
 0x1ba   : > { %p724_p11 = pnand %p723_p0, %p717_p2 }
 0x1bc   : > { %727 = shalt.err (!%p724_p11)
}
 0x1bd   : > { %s809_s22 = smov 128   ;;  %s810_s24 = smov 8  }
 0x1be   : > { %573 = dma.vmem_to_hbm [thread:$0]  (%p1061_p12), %s994_s8, 256, %s992_s15, %s395_s16, %s809_s22, %s809_s22, %s810_s24  }
 0x1bf PF: > { %p584_p13 = scmp.ge.s32.totalorder %s799_s19, 2  ;;  %s426_s9 = sand.u32 1, %s771_s12  }
 0x1c0   : > { %p1062_p1 = scmp.ne.s32.totalorder %s1059_s6, 0  ;;  %s427_s28 = scalar_lea.sflag [#allocation6], %s426_s9 }
 0x1c2   : > { %p580_p4 = pnand %p584_p13, %p1062_p1 }
 0x1c4   : > { %766 = dma.done.wait (!%p580_p4), %s427_s28, 256  }
 0x1c5   : > { %768 = vsyncadd (!%p580_p4), %s427_s28, 4294967040  ;;  %s19_s19 = sadd.s32 1, %s799_s19   ;;  %s1063_s5 = sld [smem:[#allocation10_spill]] }
 0x1c6   : > { %p16_p5 = scmp.ge.s32.totalorder %s19_s19, 8   ;;  %s1064_s12 = smov %s775_s13 }
 0x1c7   : > { %s1065_s13 = smov %s779_s14  ;;  %s1066_s14 = smov %s913_s7 }
 0x1c8   : > { %s1067_s15 = smov %s791_s17  ;;  %s1068_s16 = smov %s795_s18 }
 0x1c9   : > { %s1069_s17 = smov %s879_s25  ;;  %18 = sbr.rel (!%p16_p5) target bundleno = 7 (0x7), region = 83 }
 0x1cb   : > { %s1070_s18 = smov %s1063_s5 }
 0x1d0   :  { %432 = vsyncpa [#allocation5], 1 }
 0x1d1   :  { %434 = vsyncpa [#allocation5 + $0x1], 1 }
 0x1d2   :  { %435 = vsyncpa [#allocation6], 1 }
 0x1d3   :  { %437 = vsyncpa [#allocation6 + $0x1], 1 }

</bundles_post_ra>
